<compile_context>
chip_gen: v6e
topology: v6e:2x2x1
jax: 0.10.0
libtpu: 0.0.40
codegen_flags: <defaults>
</compile_context>

<pallas_src>
import functools

import jax
import jax.numpy as jnp
from jax.experimental import pallas as pl
from jax.experimental.pallas import tpu as pltpu


def _round_up(v, m):
    return (v + m - 1) // m * m


def _conv2d_block_kernel(x_ref, w_ref, gamma_ref, beta_ref, mask_ref, o_ref,
                         patches_s, *, kh, kw, wp, cp, nb, pl_len, inv_s, eps,
                         negative_slope):
    # x_ref:  (1, CP, L)        padded input, channel-major, L = NB*PL on lanes
    # w_ref:  (Cout, KH*KW*CP)  conv weight, tap-major, channel-padded
    # mask:   (1, PL)           1.0 at valid output positions, else 0.0
    # o_ref:  (NB, Cout, PL)    per-sample lane-dense output (padded space)
    x = x_ref[0]                                     # (CP, L)
    l = nb * pl_len

    # --- im2col in padded space: one roll per tap, tile-aligned slab stores. ---
    for i in range(kh):
        for j in range(kw):
            t = i * kw + j
            sh = i * wp + j
            rolled = x if sh == 0 else pltpu.roll(x, shift=l - sh, axis=1)
            patches_s[t * cp:(t + 1) * cp, :] = rolled   # CP = multiple of 8

    # --- Conv as ONE deep matmul (contraction = KH*KW*CP). ---------------------
    acc = jnp.dot(w_ref[...], patches_s[...],
                  preferred_element_type=jnp.float32)    # (Cout, L) f32
    # TODO(synk): request higher MXU matmul precision if exact f32 parity with
    # the framework conv is required (trades a little speed).

    mask = mask_ref[...]                                 # (1, PL)
    gamma = gamma_ref[...].astype(jnp.float32)           # (Cout, 1)
    beta = beta_ref[...].astype(jnp.float32)             # (Cout, 1)

    # --- Per-sample InstanceNorm2d over the valid positions, folded epilogue. --
    for b in range(nb):
        seg = acc[:, b * pl_len:(b + 1) * pl_len]        # (Cout, PL), lane-aligned
        mean = jnp.sum(seg * mask, axis=1, keepdims=True) * inv_s
        cen = (seg - mean) * mask
        var = jnp.sum(cen * cen, axis=1, keepdims=True) * inv_s   # biased, like torch
        scale = gamma * jax.lax.rsqrt(var + eps)          # (Cout, 1)
        shift = beta - mean * scale                       # (Cout, 1)
        y = seg * scale + shift                           # (Cout, PL)
        if negative_slope is not None:                    # optional (Leaky)ReLU
            y = jnp.where(y > 0, y, negative_slope * y)
        o_ref[b] = y.astype(o_ref.dtype)                  # unmasked lane-dense store


def conv2d_block_pallas(x, weight, gamma, beta, *, padding, stride=1,
                        eps=1e-5, negative_slope=None):
    """Forward of Conv2dBlock (default config): zero-pad -> conv -> instance norm.

    x:      (N, Cin, H, W)
    weight: (Cout, Cin, KH, KW)   conv weight (no bias, matching the module)
    gamma:  (Cout,)               InstanceNorm2d affine weight
    beta:   (Cout,)               InstanceNorm2d affine bias
    """
    n, cin, h, w_sp = x.shape
    cout, cin_w, kh, kw = weight.shape
    assert cin == cin_w, "channel mismatch between x and weight"
    assert padding >= 0
    # TODO(synk): general stride support (stride > 1) in the Pallas kernel.
    assert stride == 1, "only stride=1 implemented"

    hp, wp = h + 2 * padding, w_sp + 2 * padding
    oh, ow = hp - kh + 1, wp - kw + 1
    assert oh > 0 and ow > 0, "kernel larger than padded input"
    s = oh * ow
    p_flat = hp * wp
    pl_len = _round_up(p_flat, 128)          # lane-aligned per-sample spatial width
    cp = _round_up(cin, 8)                   # sublane-tile aligned channel count
    ck = kh * kw * cp                        # fused contraction depth

    # Batch chunk NB: largest divisor of N with a comfortably small VMEM footprint.
    # (Per-sample footprint ~ (CK + 3*CP + 2*Cout) * PL * 4B, well under 1 MiB here;
    #  VMEM is not the binding constraint on v5e/v6e/v7x for these shapes.)
    bytes_per_sample = ck * pl_len * 4
    max_nb = max(1, (2 * 1024 * 1024) // bytes_per_sample)
    nb = 1
    for cand in range(1, min(n, max_nb) + 1):
        if n % cand == 0:
            nb = cand
    g = n // nb
    l = nb * pl_len

    f32 = jnp.float32
    # ---- Input prep (wrapper-side layout plumbing, a few KB of HBM): ----------
    #   zero-pad channels to CP and spatial to (HP, WP), flatten spatial, pad the
    #   flat axis to PL, then group NB samples channel-major -> (G, CP, NB*PL).
    xp = jnp.pad(x.astype(f32), ((0, 0), (0, cp - cin),
                                 (padding, padding), (padding, padding)))
    xp = xp.reshape(n, cp, p_flat)
    xp = jnp.pad(xp, ((0, 0), (0, 0), (0, pl_len - p_flat)))
    xp = xp.reshape(g, nb, cp, pl_len).transpose(0, 2, 1, 3).reshape(g, cp, l)

    # ---- Weight: (Cout, Cin, KH, KW) -> (Cout, KH*KW*CP), tap-major, zero-padded.
    w2 = jnp.transpose(weight.astype(f32), (0, 2, 3, 1))      # (Cout, KH, KW, Cin)
    w2 = jnp.pad(w2, ((0, 0), (0, 0), (0, 0), (0, cp - cin))) # (Cout, KH, KW, CP)
    w2 = w2.reshape(cout, ck)

    gamma2 = gamma.reshape(cout, 1).astype(f32)
    beta2 = beta.reshape(cout, 1).astype(f32)

    # ---- Valid-output-position mask over one sample's padded flat spatial axis.
    pos = jnp.arange(pl_len)
    mask = ((pos < p_flat) & ((pos % wp) < ow) & ((pos // wp) < oh))
    mask = mask.astype(f32).reshape(1, pl_len)

    kernel = functools.partial(
        _conv2d_block_kernel,
        kh=kh, kw=kw, wp=wp, cp=cp, nb=nb, pl_len=pl_len,
        inv_s=1.0 / s, eps=eps, negative_slope=negative_slope,
    )

    out_pad = pl.pallas_call(
        kernel,
        out_shape=jax.ShapeDtypeStruct((n, cout, pl_len), x.dtype),
        grid_spec=pltpu.PrefetchScalarGridSpec(
            num_scalar_prefetch=0,
            grid=(g,),
            in_specs=[
                pl.BlockSpec((1, cp, l), lambda gi: (gi, 0, 0)),
                pl.BlockSpec((cout, ck), lambda gi: (0, 0)),
                pl.BlockSpec((cout, 1), lambda gi: (0, 0)),
                pl.BlockSpec((cout, 1), lambda gi: (0, 0)),
                pl.BlockSpec((1, pl_len), lambda gi: (0, 0)),
            ],
            out_specs=pl.BlockSpec((nb, cout, pl_len), lambda gi: (gi, 0, 0)),
            scratch_shapes=[pltpu.VMEM((ck, l), jnp.float32)],   # im2col scratch
        ),
        compiler_params=pltpu.CompilerParams(
            dimension_semantics=("parallel",),     # batch chunks across TCs (v7x)
            # Actual footprint is well under 1 MiB; this limit is not the driver.
            vmem_limit_bytes=32 * 1024 * 1024,
        ),
    )(xp, w2, gamma2, beta2, mask)

    # Crop padded space back to (OH, OW): pure layout plumbing in the wrapper.
    out = out_pad[:, :, :p_flat].reshape(n, cout, hp, wp)[:, :, :oh, :ow]
    return out


def conv2d_block_ref(x, weight, gamma, beta, *, padding, eps=1e-5,
                     negative_slope=None):
    """Pure-JAX reference replicating the PyTorch Conv2dBlock default forward."""
    xp = jnp.pad(x, ((0, 0), (0, 0), (padding, padding), (padding, padding)))
    y = jax.lax.conv_general_dilated(
        xp, weight, window_strides=(1, 1), padding="VALID",
        dimension_numbers=("NCHW", "OIHW", "NCHW"))
    mean = y.mean(axis=(2, 3), keepdims=True)
    var = y.var(axis=(2, 3), keepdims=True)          # biased, like InstanceNorm2d
    y = (y - mean) * jax.lax.rsqrt(var + eps)
    y = y * gamma[None, :, None, None] + beta[None, :, None, None]
    if negative_slope is not None:
        y = jnp.where(y > 0, y, negative_slope * y)
    return y


if __name__ == "__main__":
    key = jax.random.PRNGKey(0)
    kx, kw_, kg, kb = jax.random.split(key, 4)

    # Conv2dBlock(nch_in=4, nch_out=8, kernel_size=3, stride=1, padding=1)
    N, CIN, H, W = 2, 4, 16, 16
    COUT, K, PADDING = 8, 3, 1

    x = jax.random.normal(kx, (N, CIN, H, W), dtype=jnp.float32)
    weight = jax.random.normal(kw_, (COUT, CIN, K, K), dtype=jnp.float32)
    # InstanceNorm2d(affine=True) params (fresh init would be ones/zeros; use
    # non-trivial values here to exercise the affine path).
    gamma = jax.random.uniform(kg, (COUT,), minval=0.5, maxval=1.5,
                               dtype=jnp.float32)
    beta = 0.1 * jax.random.normal(kb, (COUT,), dtype=jnp.float32)

    out = conv2d_block_pallas(x, weight, gamma, beta, padding=PADDING)
    out = jax.block_until_ready(out)

    ref = conv2d_block_ref(x, weight, gamma, beta, padding=PADDING)
    assert out.shape == ref.shape, (out.shape, ref.shape)
    assert out.dtype == ref.dtype, (out.dtype, ref.dtype)
    # Loose-ish tolerance: default MXU matmul precision inside the kernel may
    # differ from the XLA conv reference; instance-norm keeps outputs O(1).
    assert jnp.allclose(out, ref, atol=2e-2, rtol=2e-2), (
        "mismatch vs reference, max abs diff = "
        f"{float(jnp.max(jnp.abs(out - ref)))}")

    print("KERNEL_OK")
</pallas_src>

<mosaic_0001>
module attributes {stable_mosaic.version = 11 : i64} {
  func.func @_conv2d_block_kernel(%arg0: i32, %arg1: memref<1x8x768xf32, #tpu.memory_space<vmem>>, %arg2: memref<8x72xf32, #tpu.memory_space<vmem>>, %arg3: memref<8x1xf32, #tpu.memory_space<vmem>>, %arg4: memref<8x1xf32, #tpu.memory_space<vmem>>, %arg5: memref<1x384xf32, #tpu.memory_space<vmem>>, %arg6: memref<2x8x384xf32, #tpu.memory_space<vmem>>, %arg7: memref<72x768xf32, #tpu.memory_space<vmem>>) attributes {dimension_semantics = [#tpu.dimension_semantics<parallel>], iteration_bounds = array<i64: 1>, scalar_prefetch = 0 : i64, scratch_operands = 1 : i64, tpu.core_type = #tpu.core_type<tc>, window_params = [{transform_indices = @transform_0, window_bounds = array<i64: 1, 8, 768>}, {pipeline_mode = #tpu.pipeline_mode<synchronous>, transform_indices = @transform_1, window_bounds = array<i64: 8, 72>}, {pipeline_mode = #tpu.pipeline_mode<synchronous>, transform_indices = @transform_2, window_bounds = array<i64: 8, 1>}, {pipeline_mode = #tpu.pipeline_mode<synchronous>, transform_indices = @transform_3, window_bounds = array<i64: 8, 1>}, {pipeline_mode = #tpu.pipeline_mode<synchronous>, transform_indices = @transform_4, window_bounds = array<i64: 1, 384>}, {transform_indices = @transform_5, window_bounds = array<i64: 2, 8, 384>}]} {
    %c0 = arith.constant 0 : index
    %c0_0 = arith.constant 0 : index
    %c0_1 = arith.constant 0 : index
    %0 = vector.load %arg1[%c0, %c0_0, %c0_1] : memref<1x8x768xf32, #tpu.memory_space<vmem>>, vector<1x8x768xf32>
    %1 = vector.shape_cast %0 : vector<1x8x768xf32> to vector<8x768xf32>
    %c0_2 = arith.constant 0 : index
    %c0_3 = arith.constant 0 : index
    %2 = vector.load %arg7[%c0_2, %c0_3] : memref<72x768xf32, #tpu.memory_space<vmem>>, vector<8x768xf32>
    tpu.vector_store %arg7[%c0_2, %c0_3], %1 {strides = array<i32>} : memref<72x768xf32, #tpu.memory_space<vmem>>, vector<8x768xf32>,
    %c767_i32 = arith.constant 767 : i32
    %3 = tpu.dynamic_rotate %1 by %c767_i32 dim 1 : vector<8x768xf32>, i32 -> vector<8x768xf32>
    %c8 = arith.constant 8 : index
    %c0_4 = arith.constant 0 : index
    %4 = vector.load %arg7[%c8, %c0_4] : memref<72x768xf32, #tpu.memory_space<vmem>>, vector<8x768xf32>
    tpu.vector_store %arg7[%c8, %c0_4], %3 {strides = array<i32>} : memref<72x768xf32, #tpu.memory_space<vmem>>, vector<8x768xf32>,
    %c766_i32 = arith.constant 766 : i32
    %5 = tpu.dynamic_rotate %1 by %c766_i32 dim 1 : vector<8x768xf32>, i32 -> vector<8x768xf32>
    %c16 = arith.constant 16 : index
    %c0_5 = arith.constant 0 : index
    %6 = vector.load %arg7[%c16, %c0_5] : memref<72x768xf32, #tpu.memory_space<vmem>>, vector<8x768xf32>
    tpu.vector_store %arg7[%c16, %c0_5], %5 {strides = array<i32>} : memref<72x768xf32, #tpu.memory_space<vmem>>, vector<8x768xf32>,
    %c750_i32 = arith.constant 750 : i32
    %7 = tpu.dynamic_rotate %1 by %c750_i32 dim 1 : vector<8x768xf32>, i32 -> vector<8x768xf32>
    %c24 = arith.constant 24 : index
    %c0_6 = arith.constant 0 : index
    %8 = vector.load %arg7[%c24, %c0_6] : memref<72x768xf32, #tpu.memory_space<vmem>>, vector<8x768xf32>
    tpu.vector_store %arg7[%c24, %c0_6], %7 {strides = array<i32>} : memref<72x768xf32, #tpu.memory_space<vmem>>, vector<8x768xf32>,
    %c749_i32 = arith.constant 749 : i32
    %9 = tpu.dynamic_rotate %1 by %c749_i32 dim 1 : vector<8x768xf32>, i32 -> vector<8x768xf32>
    %c32 = arith.constant 32 : index
    %c0_7 = arith.constant 0 : index
    %10 = vector.load %arg7[%c32, %c0_7] : memref<72x768xf32, #tpu.memory_space<vmem>>, vector<8x768xf32>
    tpu.vector_store %arg7[%c32, %c0_7], %9 {strides = array<i32>} : memref<72x768xf32, #tpu.memory_space<vmem>>, vector<8x768xf32>,
    %c748_i32 = arith.constant 748 : i32
    %11 = tpu.dynamic_rotate %1 by %c748_i32 dim 1 : vector<8x768xf32>, i32 -> vector<8x768xf32>
    %c40 = arith.constant 40 : index
    %c0_8 = arith.constant 0 : index
    %12 = vector.load %arg7[%c40, %c0_8] : memref<72x768xf32, #tpu.memory_space<vmem>>, vector<8x768xf32>
    tpu.vector_store %arg7[%c40, %c0_8], %11 {strides = array<i32>} : memref<72x768xf32, #tpu.memory_space<vmem>>, vector<8x768xf32>,
    %c732_i32 = arith.constant 732 : i32
    %13 = tpu.dynamic_rotate %1 by %c732_i32 dim 1 : vector<8x768xf32>, i32 -> vector<8x768xf32>
    %c48 = arith.constant 48 : index
    %c0_9 = arith.constant 0 : index
    %14 = vector.load %arg7[%c48, %c0_9] : memref<72x768xf32, #tpu.memory_space<vmem>>, vector<8x768xf32>
    tpu.vector_store %arg7[%c48, %c0_9], %13 {strides = array<i32>} : memref<72x768xf32, #tpu.memory_space<vmem>>, vector<8x768xf32>,
    %c731_i32 = arith.constant 731 : i32
    %15 = tpu.dynamic_rotate %1 by %c731_i32 dim 1 : vector<8x768xf32>, i32 -> vector<8x768xf32>
    %c56 = arith.constant 56 : index
    %c0_10 = arith.constant 0 : index
    %16 = vector.load %arg7[%c56, %c0_10] : memref<72x768xf32, #tpu.memory_space<vmem>>, vector<8x768xf32>
    tpu.vector_store %arg7[%c56, %c0_10], %15 {strides = array<i32>} : memref<72x768xf32, #tpu.memory_space<vmem>>, vector<8x768xf32>,
    %c730_i32 = arith.constant 730 : i32
    %17 = tpu.dynamic_rotate %1 by %c730_i32 dim 1 : vector<8x768xf32>, i32 -> vector<8x768xf32>
    %c64 = arith.constant 64 : index
    %c0_11 = arith.constant 0 : index
    %18 = vector.load %arg7[%c64, %c0_11] : memref<72x768xf32, #tpu.memory_space<vmem>>, vector<8x768xf32>
    tpu.vector_store %arg7[%c64, %c0_11], %17 {strides = array<i32>} : memref<72x768xf32, #tpu.memory_space<vmem>>, vector<8x768xf32>,
    %c0_12 = arith.constant 0 : index
    %c0_13 = arith.constant 0 : index
    %19 = vector.load %arg2[%c0_12, %c0_13] : memref<8x72xf32, #tpu.memory_space<vmem>>, vector<8x72xf32>
    %c0_14 = arith.constant 0 : index
    %c0_15 = arith.constant 0 : index
    %20 = vector.load %arg7[%c0_14, %c0_15] : memref<72x768xf32, #tpu.memory_space<vmem>>, vector<72x768xf32>
    %cst = arith.constant dense<0.000000e+00> : vector<8x768xf32>
    %21 = tpu.matmul %19, %20, %cst {dimension_numbers = #tpu.dot_dimension_numbers<[1], [0], [0], [1], [0, 0, 1, 1], [], []>} : vector<8x72xf32>, vector<72x768xf32>, vector<8x768xf32> -> vector<8x768xf32>
    %c0_16 = arith.constant 0 : index
    %c0_17 = arith.constant 0 : index
    %22 = vector.load %arg5[%c0_16, %c0_17] : memref<1x384xf32, #tpu.memory_space<vmem>>, vector<1x384xf32>
    %c0_18 = arith.constant 0 : index
    %c0_19 = arith.constant 0 : index
    %23 = vector.load %arg3[%c0_18, %c0_19] : memref<8x1xf32, #tpu.memory_space<vmem>>, vector<8x1xf32>
    %c0_20 = arith.constant 0 : index
    %c0_21 = arith.constant 0 : index
    %24 = vector.load %arg4[%c0_20, %c0_21] : memref<8x1xf32, #tpu.memory_space<vmem>>, vector<8x1xf32>
    %25 = vector.extract_strided_slice %21 {offsets = [0, 0], sizes = [8, 384], strides = [1, 1]} : vector<8x768xf32> to vector<8x384xf32>
    %26 = vector.broadcast %22 : vector<1x384xf32> to vector<8x384xf32>
    %27 = arith.mulf %25, %26 : vector<8x384xf32>
    %cst_22 = arith.constant dense<0.000000e+00> : vector<8xf32>
    %28 = vector.multi_reduction <add>, %27, %cst_22 [1] : vector<8x384xf32> to vector<8xf32>
    %29 = vector.shape_cast %28 : vector<8xf32> to vector<8x1xf32>
    %cst_23 = arith.constant 3.906250e-03 : f32
    %30 = vector.broadcast %cst_23 : f32 to vector<8x1xf32>
    %31 = arith.mulf %29, %30 : vector<8x1xf32>
    %32 = vector.broadcast %31 : vector<8x1xf32> to vector<8x384xf32>
    %33 = arith.subf %25, %32 : vector<8x384xf32>
    %34 = vector.broadcast %22 : vector<1x384xf32> to vector<8x384xf32>
    %35 = arith.mulf %33, %34 : vector<8x384xf32>
    %36 = arith.mulf %35, %35 : vector<8x384xf32>
    %cst_24 = arith.constant dense<0.000000e+00> : vector<8xf32>
    %37 = vector.multi_reduction <add>, %36, %cst_24 [1] : vector<8x384xf32> to vector<8xf32>
    %38 = vector.shape_cast %37 : vector<8xf32> to vector<8x1xf32>
    %cst_25 = arith.constant 3.906250e-03 : f32
    %39 = vector.broadcast %cst_25 : f32 to vector<8x1xf32>
    %40 = arith.mulf %38, %39 : vector<8x1xf32>
    %cst_26 = arith.constant 9.99999974E-6 : f32
    %41 = vector.broadcast %cst_26 : f32 to vector<8x1xf32>
    %42 = arith.addf %40, %41 : vector<8x1xf32>
    %43 = math.rsqrt %42 : vector<8x1xf32>
    %44 = arith.mulf %23, %43 : vector<8x1xf32>
    %45 = arith.mulf %31, %44 : vector<8x1xf32>
    %46 = arith.subf %24, %45 : vector<8x1xf32>
    %47 = vector.broadcast %44 : vector<8x1xf32> to vector<8x384xf32>
    %48 = arith.mulf %25, %47 : vector<8x384xf32>
    %49 = vector.broadcast %46 : vector<8x1xf32> to vector<8x384xf32>
    %50 = arith.addf %48, %49 : vector<8x384xf32>
    %c0_27 = arith.constant 0 : index
    %c0_28 = arith.constant 0 : index
    %c0_29 = arith.constant 0 : index
    %51 = vector.load %arg6[%c0_27, %c0_28, %c0_29] : memref<2x8x384xf32, #tpu.memory_space<vmem>>, vector<1x8x384xf32>
    %52 = vector.shape_cast %51 : vector<1x8x384xf32> to vector<8x384xf32>
    %53 = vector.shape_cast %50 : vector<8x384xf32> to vector<1x8x384xf32>
    tpu.vector_store %arg6[%c0_27, %c0_28, %c0_29], %53 {strides = array<i32>} : memref<2x8x384xf32, #tpu.memory_space<vmem>>, vector<1x8x384xf32>,
    %54 = vector.extract_strided_slice %21 {offsets = [0, 384], sizes = [8, 384], strides = [1, 1]} : vector<8x768xf32> to vector<8x384xf32>
    %55 = vector.broadcast %22 : vector<1x384xf32> to vector<8x384xf32>
    %56 = arith.mulf %54, %55 : vector<8x384xf32>
    %cst_30 = arith.constant dense<0.000000e+00> : vector<8xf32>
    %57 = vector.multi_reduction <add>, %56, %cst_30 [1] : vector<8x384xf32> to vector<8xf32>
    %58 = vector.shape_cast %57 : vector<8xf32> to vector<8x1xf32>
    %cst_31 = arith.constant 3.906250e-03 : f32
    %59 = vector.broadcast %cst_31 : f32 to vector<8x1xf32>
    %60 = arith.mulf %58, %59 : vector<8x1xf32>
    %61 = vector.broadcast %60 : vector<8x1xf32> to vector<8x384xf32>
    %62 = arith.subf %54, %61 : vector<8x384xf32>
    %63 = vector.broadcast %22 : vector<1x384xf32> to vector<8x384xf32>
    %64 = arith.mulf %62, %63 : vector<8x384xf32>
    %65 = arith.mulf %64, %64 : vector<8x384xf32>
    %cst_32 = arith.constant dense<0.000000e+00> : vector<8xf32>
    %66 = vector.multi_reduction <add>, %65, %cst_32 [1] : vector<8x384xf32> to vector<8xf32>
    %67 = vector.shape_cast %66 : vector<8xf32> to vector<8x1xf32>
    %cst_33 = arith.constant 3.906250e-03 : f32
    %68 = vector.broadcast %cst_33 : f32 to vector<8x1xf32>
    %69 = arith.mulf %67, %68 : vector<8x1xf32>
    %cst_34 = arith.constant 9.99999974E-6 : f32
    %70 = vector.broadcast %cst_34 : f32 to vector<8x1xf32>
    %71 = arith.addf %69, %70 : vector<8x1xf32>
    %72 = math.rsqrt %71 : vector<8x1xf32>
    %73 = arith.mulf %23, %72 : vector<8x1xf32>
    %74 = arith.mulf %60, %73 : vector<8x1xf32>
    %75 = arith.subf %24, %74 : vector<8x1xf32>
    %76 = vector.broadcast %73 : vector<8x1xf32> to vector<8x384xf32>
    %77 = arith.mulf %54, %76 : vector<8x384xf32>
    %78 = vector.broadcast %75 : vector<8x1xf32> to vector<8x384xf32>
    %79 = arith.addf %77, %78 : vector<8x384xf32>
    %c1 = arith.constant 1 : index
    %c0_35 = arith.constant 0 : index
    %c0_36 = arith.constant 0 : index
    %80 = vector.load %arg6[%c1, %c0_35, %c0_36] : memref<2x8x384xf32, #tpu.memory_space<vmem>>, vector<1x8x384xf32>
    %81 = vector.shape_cast %80 : vector<1x8x384xf32> to vector<8x384xf32>
    %82 = vector.shape_cast %79 : vector<8x384xf32> to vector<1x8x384xf32>
    tpu.vector_store %arg6[%c1, %c0_35, %c0_36], %82 {strides = array<i32>} : memref<2x8x384xf32, #tpu.memory_space<vmem>>, vector<1x8x384xf32>,
    return
  }
  func.func @transform_0(%arg0: i32) -> (i32, i32, i32) {
    %c0_i32 = arith.constant 0 : i32
    %c0_i32_0 = arith.constant 0 : i32
    %c0_i32_1 = arith.constant 0 : i32
    return %arg0, %c0_i32, %c0_i32_0 : i32, i32, i32
  }
  func.func @transform_1(%arg0: i32) -> (i32, i32) {
    %c0_i32 = arith.constant 0 : i32
    %c0_i32_0 = arith.constant 0 : i32
    %c0_i32_1 = arith.constant 0 : i32
    return %c0_i32, %c0_i32_0 : i32, i32
  }
  func.func @transform_2(%arg0: i32) -> (i32, i32) {
    %c0_i32 = arith.constant 0 : i32
    %c0_i32_0 = arith.constant 0 : i32
    %c0_i32_1 = arith.constant 0 : i32
    return %c0_i32, %c0_i32_0 : i32, i32
  }
  func.func @transform_3(%arg0: i32) -> (i32, i32) {
    %c0_i32 = arith.constant 0 : i32
    %c0_i32_0 = arith.constant 0 : i32
    %c0_i32_1 = arith.constant 0 : i32
    return %c0_i32, %c0_i32_0 : i32, i32
  }
  func.func @transform_4(%arg0: i32) -> (i32, i32) {
    %c0_i32 = arith.constant 0 : i32
    %c0_i32_0 = arith.constant 0 : i32
    %c0_i32_1 = arith.constant 0 : i32
    return %c0_i32, %c0_i32_0 : i32, i32
  }
  func.func @transform_5(%arg0: i32) -> (i32, i32, i32) {
    %c0_i32 = arith.constant 0 : i32
    %c0_i32_0 = arith.constant 0 : i32
    %c0_i32_1 = arith.constant 0 : i32
    return %arg0, %c0_i32, %c0_i32_0 : i32, i32, i32
  }
}

</mosaic_0001>

<bundles_post_ra>
// kernel: tpu_custom_call.1
= control target key start
LH: loop header
LB: loop body
LE: loop exit
PB: predicated region body
PF: predicated region fallthrough
CT: control target
= control target key end

     0   :  { %10 = vsyncpa [#allocation4], 0  ;;  %s1104_s0 = inlined_call_operand.hbm [shape: f32[1,8,768], index: 0, kind: input, shape index: {}]   ;;  %s1105_s1 = inlined_call_operand.vmem [shape: f32[8,72], index: 1, kind: input, shape index: {}]   ;;  %s1106_s2 = inlined_call_operand.vmem [shape: f32[8,1], index: 2, kind: input, shape index: {}]   ;;  %s1107_s3 = inlined_call_operand.vmem [shape: f32[8,1], index: 3, kind: input, shape index: {}]   ;;  %s1108_s4 = inlined_call_operand.vmem [shape: f32[1,384], index: 4, kind: input, shape index: {}]   ;;  %s1109_s5 = inlined_call_operand.hbm [shape: f32[2,8,384], index: 5, kind: output, shape index: {}]  }
   0x1   :  { %11 = vsyncpa [#allocation5], 0  ;;  %s715_s18 = smov [#allocation3]  }
   0x2   :  { %s18_s19 = sshll.u32 %s715_s18, 4  ;;  %s19_s19 = int_to_ptr.vmem [resolvable:$true] %s18_s19 }
   0x3   :  { %s679_s20 = scalar_lea.vmem %s19_s19, 768  ;;  %p684_p1 = scmp.lt.s32.totalorder %s19_s19, %s19_s19 }
   0x4   :  { %p680_p0 = scmp.ne.s32.totalorder %s19_s19, %s679_s20  ;;  %p685_p2 = scmp.lt.s32.totalorder %s679_s20, %s679_s20 }
   0x6   :  { %p686_p3 = por %p685_p2, %p684_p1 }
   0x8   :  { %p687_p4 = pnand %p686_p3, %p680_p0 }
   0xa   :  { %690 = shalt.err (!%p687_p4)
}
   0xb   :  { %21 = dma.hbm_to_vmem [thread:$0]  %s1104_s0, 768, %s19_s19, [#allocation4]  }
   0xc   :  { %711 = dma.done.wait [#allocation4], 768  }
   0xd   :  { %712 = vsyncadd [#allocation4], 4294966528  ;;  %v762_v0 = vld [vmem:[#allocation3 + $0x8] sm:$0xff]  ;;  %v764_v1 = vld [vmem:[#allocation3] sm:$0xff]  ;;  %s716_s23 = smov 90   ;;  %s717_s24 = smov 91   ;;  %v57_v7 = vlaneseq }
   0xe   :  { %224 = vrot.lane.b32.xlu0 %v762_v0, %s716_s23  ;;  %222 = vrot.lane.b32.xlu1 %v764_v1, %s716_s23  ;;  %v770_v2 = vld [vmem:[#allocation3 + $0x10] sm:$0xff]  ;;  %s718_s0 = smov 92   ;;  %s719_s25 = smov 108   ;;  %v816_v3 = vld [vmem:[#allocation3 + $0x18] sm:$0xff]  ;;  %v818_v4 = vld [vmem:[#allocation3 + $0x20] sm:$0xff]  ;;  %v724_v5 = vmov 0.0  }
   0xf   :  { %s720_s26 = smov 109   ;;  %s721_s27 = smov 110   ;;  %370 = vmatprep.mubr.f32.mxu0 %v724_v5  ;;  %441 = vmatprep.mubr.f32.mxu1 %v724_v5  ;;  %v830_v6 = vld [vmem:[#allocation3 + $0x28] sm:$0xff]  ;;  %v873_v8 = vand.u32 127, %v57_v7  ;;  %v966_v49 = vld [vmem:[%s1105_s1] sm:$0xff]  ;;  %vm302_vm8 = vcmask 588800  }
  0x10   :  { %s722_s28 = smov 126   ;;  %s723_s29 = smov 127  }
  0x11   :  { %vm234_vm0 = vcmp.lt.s32.totalorder %v873_v8, 90  ;;  %vm209_vm1 = vcmp.lt.s32.totalorder %v873_v8, 91  ;;  %vm184_vm2 = vcmp.lt.s32.totalorder %v873_v8, 92  ;;  %vm159_vm3 = vcmp.lt.s32.totalorder %v873_v8, 108 }
  0x12   :  { %226 = vrot.lane.b32.xlu0 %v770_v2, %s716_s23  ;;  %199 = vrot.lane.b32.xlu1 %v762_v0, %s717_s24  ;;  %vm134_vm4 = vcmp.lt.s32.totalorder %v873_v8, 109  ;;  %vm109_vm5 = vcmp.lt.s32.totalorder %v873_v8, 110  ;;  %vm84_vm6 = vcmp.lt.s32.totalorder %v873_v8, 126  ;;  %vm59_vm7 = vcmp.lt.s32.totalorder %v873_v8, 127  ;;  %v519_v8 = vld [vmem:[%s1108_s4] sm:$0x7] }
  0x16   :  { %201 = vrot.lane.b32.xlu0 %v770_v2, %s717_s24  ;;  %197 = vrot.lane.b32.xlu1 %v764_v1, %s717_s24 }
  0x1a   :  { %174 = vrot.lane.b32.xlu0 %v762_v0, %s718_s0  ;;  %176 = vrot.lane.b32.xlu1 %v770_v2, %s718_s0 }
  0x1e   :  { %172 = vrot.lane.b32.xlu0 %v764_v1, %s718_s0  ;;  %149 = vrot.lane.b32.xlu1 %v762_v0, %s719_s25 }
  0x22   :  { %151 = vrot.lane.b32.xlu0 %v770_v2, %s719_s25  ;;  %147 = vrot.lane.b32.xlu1 %v764_v1, %s719_s25 }
  0x26   :  { %124 = vrot.lane.b32.xlu0 %v762_v0, %s720_s26  ;;  %126 = vrot.lane.b32.xlu1 %v770_v2, %s720_s26 }
  0x2a   :  { %122 = vrot.lane.b32.xlu0 %v764_v1, %s720_s26  ;;  %99 = vrot.lane.b32.xlu1 %v762_v0, %s721_s27 }
  0x2e   :  { %101 = vrot.lane.b32.xlu0 %v770_v2, %s721_s27  ;;  %97 = vrot.lane.b32.xlu1 %v764_v1, %s721_s27 }
  0x32   :  { %74 = vrot.lane.b32.xlu0 %v762_v0, %s722_s28  ;;  %76 = vrot.lane.b32.xlu1 %v770_v2, %s722_s28 }
  0x36   :  { %72 = vrot.lane.b32.xlu0 %v764_v1, %s722_s28  ;;  %47 = vrot.lane.b32.xlu1 %v762_v0, %s723_s29 }
  0x3a   :  { %49 = vrot.lane.b32.xlu0 %v770_v2, %s723_s29  ;;  %45 = vrot.lane.b32.xlu1 %v764_v1, %s723_s29 }
  0x3e   :  { %228 = vrot.lane.b32.xlu0 %v816_v3, %s716_s23  ;;  %230 = vrot.lane.b32.xlu1 %v818_v4, %s716_s23 }
  0x42   :  { %203 = vrot.lane.b32.xlu0 %v816_v3, %s717_s24  ;;  %205 = vrot.lane.b32.xlu1 %v818_v4, %s717_s24 }
  0x46   :  { %232 = vrot.lane.b32.xlu0 %v830_v6, %s716_s23  ;;  %178 = vrot.lane.b32.xlu1 %v816_v3, %s718_s0 }
  0x4a   :  { %180 = vrot.lane.b32.xlu0 %v818_v4, %s718_s0  ;;  %207 = vrot.lane.b32.xlu1 %v830_v6, %s717_s24 }
  0x4e   :  { %153 = vrot.lane.b32.xlu0 %v816_v3, %s719_s25  ;;  %155 = vrot.lane.b32.xlu1 %v818_v4, %s719_s25 }
  0x52   :  { %182 = vrot.lane.b32.xlu0 %v830_v6, %s718_s0  ;;  %128 = vrot.lane.b32.xlu1 %v816_v3, %s720_s26 }
  0x56   :  { %130 = vrot.lane.b32.xlu0 %v818_v4, %s720_s26  ;;  %157 = vrot.lane.b32.xlu1 %v830_v6, %s719_s25 }
  0x5a   :  { %103 = vrot.lane.b32.xlu0 %v816_v3, %s721_s27  ;;  %105 = vrot.lane.b32.xlu1 %v818_v4, %s721_s27 }
  0x5e   :  { %132 = vrot.lane.b32.xlu0 %v830_v6, %s720_s26  ;;  %78 = vrot.lane.b32.xlu1 %v816_v3, %s722_s28 }
  0x62   :  { %80 = vrot.lane.b32.xlu0 %v818_v4, %s722_s28  ;;  %107 = vrot.lane.b32.xlu1 %v830_v6, %s721_s27 }
  0x66   :  { %51 = vrot.lane.b32.xlu0 %v816_v3, %s723_s29  ;;  %53 = vrot.lane.b32.xlu1 %v818_v4, %s723_s29 }
  0x6a   :  { %82 = vrot.lane.b32.xlu0 %v830_v6, %s722_s28  ;;  %55 = vrot.lane.b32.xlu1 %v830_v6, %s723_s29 }
  0x80   :  { %v225_v9 = vpop.permute.xlu0 %224  ;;  %v875_v10 = vpop.permute.xlu1 %222 }
  0x81   :  { %v239_v14 = vsel %vm234_vm0, %v875_v10, %v225_v9 }
  0x84   :  { %v878_v11 = vpop.permute.xlu0 %226  ;;  %v200_v12 = vpop.permute.xlu1 %199 }
  0x85   :  { %v238_v13 = vsel %vm234_vm0, %v225_v9, %v878_v11 }
  0x86   :  { %320 = vmatprep.subr.mxu0 %v238_v13 }
  0x87   :  { %321 = vmatpush1.msra.mxu0 %v239_v14 }
  0x88   :  { %v887_v15 = vpop.permute.xlu0 %201  ;;  %v889_v16 = vpop.permute.xlu1 %197 }
  0x89   :  { %v213_v17 = vsel %vm209_vm1, %v200_v12, %v887_v15  ;;  %v214_v18 = vsel %vm209_vm1, %v889_v16, %v200_v12 }
  0x8a   :  { %322 = vmatprep.subr.mxu0 %v213_v17 }
  0x8b   :  { %323 = vmatpush1.msra.mxu0 %v214_v18 }
  0x8c   :  { %v175_v19 = vpop.permute.xlu0 %174  ;;  %v898_v20 = vpop.permute.xlu1 %176 }
  0x8d   :  { %v188_v21 = vsel %vm184_vm2, %v175_v19, %v898_v20 }
  0x8e   :  { %324 = vmatprep.subr.mxu0 %v188_v21 }
  0x90   :  { %v903_v22 = vpop.permute.xlu0 %172  ;;  %v150_v23 = vpop.permute.xlu1 %149 }
  0x91   :  { %v189_v24 = vsel %vm184_vm2, %v903_v22, %v175_v19 }
  0x92   :  { %325 = vmatpush1.msra.mxu0 %v189_v24 }
  0x94   :  { %v909_v25 = vpop.permute.xlu0 %151  ;;  %v911_v26 = vpop.permute.xlu1 %147 }
  0x95   :  { %v163_v27 = vsel %vm159_vm3, %v150_v23, %v909_v25  ;;  %v164_v28 = vsel %vm159_vm3, %v911_v26, %v150_v23 }
  0x96   :  { %326 = vmatprep.subr.mxu0 %v163_v27 }
  0x97   :  { %327 = vmatpush1.msra.mxu0 %v164_v28 }
  0x98   :  { %v125_v29 = vpop.permute.xlu0 %124  ;;  %v920_v30 = vpop.permute.xlu1 %126 }
  0x99   :  { %v138_v31 = vsel %vm134_vm4, %v125_v29, %v920_v30 }
  0x9a   :  { %328 = vmatprep.subr.mxu0 %v138_v31 }
  0x9c   :  { %v925_v32 = vpop.permute.xlu0 %122  ;;  %v100_v33 = vpop.permute.xlu1 %99 }
  0x9d   :  { %v139_v34 = vsel %vm134_vm4, %v925_v32, %v125_v29 }
  0x9e   :  { %329 = vmatpush1.msra.mxu0 %v139_v34 }
  0xa0   :  { %v931_v35 = vpop.permute.xlu0 %101  ;;  %v933_v36 = vpop.permute.xlu1 %97 }
  0xa1   :  { %v113_v37 = vsel %vm109_vm5, %v100_v33, %v931_v35  ;;  %v114_v38 = vsel %vm109_vm5, %v933_v36, %v100_v33 }
  0xa2   :  { %330 = vmatprep.subr.mxu0 %v113_v37 }
  0xa3   :  { %331 = vmatpush1.msra.mxu0 %v114_v38 }
  0xa4   :  { %v75_v39 = vpop.permute.xlu0 %74  ;;  %v942_v40 = vpop.permute.xlu1 %76 }
  0xa5   :  { %v88_v41 = vsel %vm84_vm6, %v75_v39, %v942_v40 }
  0xa6   :  { %332 = vmatprep.subr.mxu0 %v88_v41 }
  0xa8   :  { %v947_v42 = vpop.permute.xlu0 %72  ;;  %v48_v43 = vpop.permute.xlu1 %47 }
  0xa9   :  { %v89_v44 = vsel %vm84_vm6, %v947_v42, %v75_v39 }
  0xaa   :  { %333 = vmatpush1.msra.mxu0 %v89_v44 }
  0xac   :  { %v953_v45 = vpop.permute.xlu0 %49  ;;  %v955_v46 = vpop.permute.xlu1 %45 }
  0xad   :  { %v63_v47 = vsel %vm59_vm7, %v48_v43, %v953_v45  ;;  %v64_v48 = vsel %vm59_vm7, %v955_v46, %v48_v43 }
  0xae   :  { %334 = vmatprep.subr.mxu0 %v63_v47 }
  0xaf   :  { %335 = vmatpush1.msra.mxu0 %v64_v48 }
  0xb0   :  { %v229_v50 = vpop.permute.xlu0 %228  ;;  %v231_v51 = vpop.permute.xlu1 %230  ;;  %336 = vmatprep.subr.mxu0 %v762_v0 }
  0xb1   :  { %v236_v52 = vsel %vm234_vm0, %v229_v50, %v231_v51  ;;  %v237_v53 = vsel %vm234_vm0, %v878_v11, %v229_v50  ;;  %337 = vmatpush1.msra.mxu0 %v764_v1 }
  0xb2   :  { %391 = vmatprep.subr.mxu1 %v236_v52  ;;  %648 = vmatmul.mubr.msk.f32.vlgmr.msra.gmra.mxu0 %vm302_vm8, %v966_v49 }
  0xb3   :  { %392 = vmatpush1.msra.mxu1 %v237_v53  ;;  %512 = vmatprep.mubr.f32.mxu0 %v724_v5 }
  0xb4   :  { %v204_v54 = vpop.permute.xlu0 %203  ;;  %v206_v55 = vpop.permute.xlu1 %205 }
  0xb5   :  { %v211_v56 = vsel %vm209_vm1, %v204_v54, %v206_v55  ;;  %v212_v57 = vsel %vm209_vm1, %v887_v15, %v204_v54 }
  0xb6   :  { %393 = vmatprep.subr.mxu1 %v211_v56 }
  0xb7   :  { %394 = vmatpush1.msra.mxu1 %v212_v57 }
  0xb8   :  { %v233_v58 = vpop.permute.xlu0 %232  ;;  %v179_v59 = vpop.permute.xlu1 %178 }
  0xb9   :  { %v235_v60 = vsel %vm234_vm0, %v231_v51, %v233_v58  ;;  %v240_v61 = vsel %vm234_vm0, %v233_v58, %v875_v10  ;;  %v187_v9 = vsel %vm184_vm2, %v898_v20, %v179_v59 }
  0xba   :  { %462 = vmatprep.subr.mxu0 %v240_v61 }
  0xbb   :  { %463 = vmatpush1.msra.mxu0 %v235_v60 }
  0xbc   :  { %v181_v62 = vpop.permute.xlu0 %180  ;;  %v208_v63 = vpop.permute.xlu1 %207 }
  0xbd   :  { %v210_v0 = vsel %vm209_vm1, %v206_v55, %v208_v63  ;;  %v186_v1 = vsel %vm184_vm2, %v179_v59, %v181_v62  ;;  %v215_v5 = vsel %vm209_vm1, %v208_v63, %v889_v16 }
  0xbe   :  { %395 = vmatprep.subr.mxu1 %v186_v1  ;;  %464 = vmatprep.subr.mxu0 %v215_v5 }
  0xbf   :  { %396 = vmatpush1.msra.mxu1 %v187_v9  ;;  %465 = vmatpush1.msra.mxu0 %v210_v0 }
  0xc0   :  { %v154_v10 = vpop.permute.xlu0 %153  ;;  %v156_v11 = vpop.permute.xlu1 %155 }
  0xc1   :  { %v161_v12 = vsel %vm159_vm3, %v154_v10, %v156_v11  ;;  %v162_v13 = vsel %vm159_vm3, %v909_v25, %v154_v10 }
  0xc2   :  { %397 = vmatprep.subr.mxu1 %v161_v12 }
  0xc3   :  { %398 = vmatpush1.msra.mxu1 %v162_v13 }
  0xc4   :  { %v183_v14 = vpop.permute.xlu0 %182  ;;  %v129_v15 = vpop.permute.xlu1 %128 }
  0xc5   :  { %v185_v16 = vsel %vm184_vm2, %v181_v62, %v183_v14  ;;  %v190_v17 = vsel %vm184_vm2, %v183_v14, %v903_v22  ;;  %v137_v22 = vsel %vm134_vm4, %v920_v30, %v129_v15 }
  0xc6   :  { %466 = vmatprep.subr.mxu0 %v190_v17 }
  0xc7   :  { %467 = vmatpush1.msra.mxu0 %v185_v16 }
  0xc8   :  { %v131_v18 = vpop.permute.xlu0 %130  ;;  %v158_v19 = vpop.permute.xlu1 %157 }
  0xc9   :  { %v160_v20 = vsel %vm159_vm3, %v156_v11, %v158_v19  ;;  %v136_v21 = vsel %vm134_vm4, %v129_v15, %v131_v18  ;;  %v165_v23 = vsel %vm159_vm3, %v158_v19, %v911_v26 }
  0xca   :  { %399 = vmatprep.subr.mxu1 %v136_v21  ;;  %468 = vmatprep.subr.mxu0 %v165_v23 }
  0xcb   :  { %400 = vmatpush1.msra.mxu1 %v137_v22  ;;  %469 = vmatpush1.msra.mxu0 %v160_v20 }
  0xcc   :  { %v104_v24 = vpop.permute.xlu0 %103  ;;  %v106_v25 = vpop.permute.xlu1 %105 }
  0xcd   :  { %v111_v27 = vsel %vm109_vm5, %v104_v24, %v106_v25  ;;  %v112_v28 = vsel %vm109_vm5, %v931_v35, %v104_v24 }
  0xce   :  { %401 = vmatprep.subr.mxu1 %v111_v27 }
  0xcf   :  { %402 = vmatpush1.msra.mxu1 %v112_v28 }
  0xd0   :  { %v133_v26 = vpop.permute.xlu0 %132  ;;  %v79_v29 = vpop.permute.xlu1 %78 }
  0xd1   :  { %v135_v31 = vsel %vm134_vm4, %v131_v18, %v133_v26  ;;  %v140_v30 = vsel %vm134_vm4, %v133_v26, %v925_v32  ;;  %v87_v32 = vsel %vm84_vm6, %v942_v40, %v79_v29 }
  0xd2   :  { %470 = vmatprep.subr.mxu0 %v140_v30 }
  0xd3   :  { %471 = vmatpush1.msra.mxu0 %v135_v31 }
  0xd4   :  { %v81_v33 = vpop.permute.xlu0 %80  ;;  %v108_v34 = vpop.permute.xlu1 %107 }
  0xd5   :  { %v110_v37 = vsel %vm109_vm5, %v106_v25, %v108_v34  ;;  %v86_v35 = vsel %vm84_vm6, %v79_v29, %v81_v33  ;;  %v115_v38 = vsel %vm109_vm5, %v108_v34, %v933_v36 }
  0xd6   :  { %403 = vmatprep.subr.mxu1 %v86_v35  ;;  %472 = vmatprep.subr.mxu0 %v115_v38 }
  0xd7   :  { %404 = vmatpush1.msra.mxu1 %v87_v32  ;;  %473 = vmatpush1.msra.mxu0 %v110_v37  ;;  %v725_v37 = vmov 0  }
  0xd8   :  { %v52_v39 = vpop.permute.xlu0 %51  ;;  %v54_v41 = vpop.permute.xlu1 %53  ;;  %665 = vset.pattern.permute.xlu1 %v725_v37  ;;  %666 = vset.pattern.permute.xlu0 %v725_v37 }
  0xd9   :  { %v61_v43 = vsel %vm59_vm7, %v52_v39, %v54_v41  ;;  %v62_v44 = vsel %vm59_vm7, %v953_v45, %v52_v39 }
  0xda   :  { %405 = vmatprep.subr.mxu1 %v61_v43 }
  0xdb   :  { %406 = vmatpush1.msra.mxu1 %v62_v44  ;;  %v520_v44 = vld [vmem:[%s1106_s2] sm:$0xff]  ;;  %s726_s2 = smov [#allocation6]  }
  0xdc   :  { %v83_v36 = vpop.permute.xlu0 %82  ;;  %407 = vmatprep.subr.mxu1 %v816_v3  ;;  %v56_v47 = vpop.permute.xlu1 %55 }
  0xdd   :  { %v85_v40 = vsel %vm84_vm6, %v81_v33, %v83_v36  ;;  %408 = vmatpush1.msra.mxu1 %v770_v2  ;;  %v90_v48 = vsel %vm84_vm6, %v83_v36, %v947_v42  ;;  %v65_v45 = vsel %vm59_vm7, %v56_v47, %v955_v46  ;;  %v60_v3 = vsel %vm59_vm7, %v54_v41, %v56_v47 }
  0xde   :  { %649 = vmatmul.mubr.msk.f32.vlgmr.msra.gmra.mxu1 %vm302_vm8, %v966_v49  ;;  %474 = vmatprep.subr.mxu0 %v90_v48  ;;  %v524_v2 = vshrl.u32 %v57_v7, 7 }
  0xdf   :  { %475 = vmatpush1.msra.mxu0 %v85_v40  ;;  %v521_v40 = vld [vmem:[%s1107_s3] sm:$0xff]  ;;  %s636_s3 = sshll.u32 %s726_s2, 4  ;;  %s637_s3 = int_to_ptr.vmem [resolvable:$true] %s636_s3 }
  0xe0   :  { %476 = vmatprep.subr.mxu0 %v65_v45  ;;  %v525_v42 = vsub.s32 0, %v524_v2  ;;  %v529_v50 = vsub.s32 1, %v524_v2  ;;  %v533_v53 = vsub.s32 2, %v524_v2  ;;  %s691_s11 = scalar_lea.vmem %s637_s3, 768  ;;  %p696_p6 = scmp.lt.s32.totalorder %s637_s3, %s637_s3 }
  0xe1   :  { %477 = vmatpush1.msra.mxu0 %v60_v3  ;;  %p692_p5 = scmp.ne.s32.totalorder %s637_s3, %s691_s11  ;;  %p697_p7 = scmp.lt.s32.totalorder %s691_s11, %s691_s11 }
  0xe2   :  { %478 = vmatprep.subr.mxu0 %v830_v6  ;;  %v526_v46 = vrot.slane %v519_v8, %v525_v42  ;;  %v530_v52 = vrot.slane %v519_v8, %v529_v50 }
  0xe3   :  { %479 = vmatpush1.msra.mxu0 %v818_v4  ;;  %p698_p8 = por %p697_p7, %p696_p6 }
  0xe4   :  { %650 = vmatmul.mubr.msk.f32.vlgmr.msra.gmra.mxu0 %vm302_vm8, %v966_v49  ;;  %v534_v49 = vrot.slane %v519_v8, %v533_v53 }
  0xe5   :  { %p699_p9 = pnand %p698_p8, %p692_p5 }
 0x172   :  { %v1062_v51 = vpop.f32.mrf.mxu0 }
 0x173   :  { %v538_v4 = vmul.f32 %v526_v46, %v1062_v51 }
 0x174   :  { %v1067_v54 = vpop.f32.mrf.mxu0 }
 0x175   :  { %v539_v6 = vmul.f32 %v530_v52, %v1067_v54 }
 0x177   :  { %v541_v56 = vadd.f32 %v539_v6, %v538_v4 }
 0x19e   :  { %v1071_v55 = vpop.f32.mrf.mxu1 }
 0x19f   :  { %v540_v7 = vmul.f32 %v534_v49, %v1071_v55 }
 0x1a0   :  { %v1074_v58 = vpop.f32.mrf.mxu1 }
 0x1a1   :  { %v542_v57 = vadd.f32 %v541_v56, %v540_v7  ;;  %v584_v60 = vmul.f32 %v526_v46, %v1074_v58 }
 0x1a3   :  { %543 = vadd.xlane.f32.xlu0 %v542_v57 }
 0x1a4   :  { %v1076_v59 = vpop.f32.mrf.mxu0 }
 0x1a5   :  { %v585_v61 = vmul.f32 %v530_v52, %v1076_v59 }
 0x1a6   :  { %v1080_v62 = vpop.f32.mrf.mxu0 }
 0x1a7   :  { %v586_v63 = vmul.f32 %v534_v49, %v1080_v62  ;;  %v587_v0 = vadd.f32 %v585_v61, %v584_v60 }
 0x1a9   :  { %v588_v1 = vadd.f32 %v587_v0, %v586_v63 }
 0x1ab   :  { %589 = vadd.xlane.f32.xlu1 %v588_v1 }
 0x22c   :  { %v544_v5 = vpop.xlane.xlu0 %543 }
 0x22d   :  { %v545_v9 = vmul.f32 0.00390625, %v544_v5 }
 0x22f   :  { %v546_v10 = vsub.f32 %v1062_v51, %v545_v9  ;;  %v547_v11 = vsub.f32 %v1067_v54, %v545_v9  ;;  %v548_v12 = vsub.f32 %v1071_v55, %v545_v9 }
 0x231   :  { %v549_v13 = vmul.f32 %v546_v10, %v526_v46  ;;  %v550_v14 = vmul.f32 %v547_v11, %v530_v52  ;;  %v551_v15 = vmul.f32 %v548_v12, %v534_v49 }
 0x233   :  { %v552_v16 = vmul.f32 %v549_v13, %v549_v13  ;;  %v553_v17 = vmul.f32 %v550_v14, %v550_v14  ;;  %v554_v20 = vmul.f32 %v551_v15, %v551_v15 }
 0x234   :  { %v590_v18 = vpop.xlane.xlu1 %589 }
 0x235   :  { %v591_v19 = vmul.f32 0.00390625, %v590_v18  ;;  %v555_v21 = vadd.f32 %v553_v17, %v552_v16 }
 0x237   :  { %v556_v23 = vadd.f32 %v555_v21, %v554_v20  ;;  %v592_v22 = vsub.f32 %v1074_v58, %v591_v19  ;;  %v593_v24 = vsub.f32 %v1076_v59, %v591_v19  ;;  %v594_v25 = vsub.f32 %v1080_v62, %v591_v19 }
 0x239   :  { %557 = vadd.xlane.f32.xlu0 %v556_v23  ;;  %v595_v27 = vmul.f32 %v592_v22, %v526_v46  ;;  %v596_v28 = vmul.f32 %v593_v24, %v530_v52  ;;  %v597_v26 = vmul.f32 %v594_v25, %v534_v49 }
 0x23b   :  { %v598_v29 = vmul.f32 %v595_v27, %v595_v27  ;;  %v599_v31 = vmul.f32 %v596_v28, %v596_v28  ;;  %v600_v30 = vmul.f32 %v597_v26, %v597_v26 }
 0x23d   :  { %v601_v33 = vadd.f32 %v599_v31, %v598_v29 }
 0x23f   :  { %v602_v34 = vadd.f32 %v601_v33, %v600_v30 }
 0x241   :  { %603 = vadd.xlane.f32.xlu0 %v602_v34 }
 0x2c2   :  { %v558_v35 = vpop.xlane.xlu0 %557 }
 0x2c3   :  { %v559_v38 = vmul.f32 0.00390625, %v558_v35 }
 0x2c5   :  { %v560_v32 = vadd.f32 1e-05, %v559_v38 }
 0x2c7   :  { %667 = vrsqrt.f32 %v560_v32 }
 0x2ca   :  { %v604_v39 = vpop.xlane.xlu0 %603 }
 0x2cb   :  { %v605_v41 = vmul.f32 0.00390625, %v604_v39 }
 0x2cd   :  { %v606_v43 = vadd.f32 1e-05, %v605_v41 }
 0x2cf   :  { %669 = vrsqrt.f32 %v606_v43 }
 0x2d4   :  { %v668_v36 = vpop.eup %667 }
 0x2d5   :  { %v562_v47 = vmul.f32 %v668_v36, %v520_v44 }
 0x2d7   :  { %567 = vperm.xlu1 %665, %v562_v47   ;;  %v563_v48 = vmul.f32 %v562_v47, %v545_v9 }
 0x2d9   :  { %v564_v45 = vsub.f32 %v521_v40, %v563_v48 }
 0x2db   :  { %575 = vperm.xlu1 %665, %v564_v45  }
 0x2dc   :  { %v670_v3 = vpop.eup %669 }
 0x2dd   :  { %v608_v2 = vmul.f32 %v670_v3, %v520_v44 }
 0x2df   :  { %613 = vperm.xlu0 %666, %v608_v2   ;;  %v609_v42 = vmul.f32 %v608_v2, %v591_v19 }
 0x2e1   :  { %v610_v50 = vsub.f32 %v521_v40, %v609_v42 }
 0x2e3   :  { %621 = vperm.xlu1 %665, %v610_v50  }
 0x352   :  { %v568_v8 = vpop.permute.xlu1 %567 }
 0x353   :  { %v570_v46 = vmul.f32 %v568_v8, %v1062_v51  ;;  %v571_v52 = vmul.f32 %v568_v8, %v1067_v54  ;;  %v572_v53 = vmul.f32 %v568_v8, %v1071_v55 }
 0x356   :  { %v576_v4 = vpop.permute.xlu1 %575 }
 0x357   :  { %v578_v6 = vadd.f32 %v576_v4, %v570_v46  ;;  %v579_v49 = vadd.f32 %v576_v4, %v571_v52  ;;  %v580_v7 = vadd.f32 %v576_v4, %v572_v53 }
 0x359   :  { %581 = vst [vmem:[#allocation6] sm:$0xff] %v578_v6  ;;  %582 = vst [vmem:[#allocation6 + $0x8] sm:$0xff] %v579_v49 }
 0x35a   :  { %583 = vst [vmem:[#allocation6 + $0x10] sm:$0xff] %v580_v7  ;;  %v614_v56 = vpop.permute.xlu0 %613 }
 0x35b   :  { %v616_v57 = vmul.f32 %v614_v56, %v1074_v58  ;;  %v617_v60 = vmul.f32 %v614_v56, %v1076_v59  ;;  %v618_v51 = vmul.f32 %v614_v56, %v1080_v62 }
 0x35e   :  { %v622_v61 = vpop.permute.xlu1 %621 }
 0x35f   :  { %v624_v54 = vadd.f32 %v622_v61, %v616_v57  ;;  %v625_v55 = vadd.f32 %v622_v61, %v617_v60  ;;  %v626_v63 = vadd.f32 %v622_v61, %v618_v51 }
 0x361   :  { %628 = vst [vmem:[#allocation6 + $0x18] sm:$0xff] %v624_v54  ;;  %629 = vst [vmem:[#allocation6 + $0x20] sm:$0xff] %v625_v55 }
 0x362   :  { %630 = vst [vmem:[#allocation6 + $0x28] sm:$0xff] %v626_v63 }
 0x363   :  { %702 = shalt.err (!%p699_p9)
}
 0x364   :  { %s727_s12 = smov 384   ;;  %s728_s13 = smov 24  }
 0x365   :  { %642 = dma.vmem_to_hbm [thread:$0]  %s637_s3, 768, %s1109_s5, [#allocation5], %s727_s12, %s727_s12, %s728_s13  }
 0x366   :  { %713 = dma.done.wait [#allocation5], 768  }
 0x367   :  { %714 = vsyncadd [#allocation5], 4294966528 }
 0x368   :  { %646 = vsyncpa [#allocation4], 1 }
 0x369   :  { %647 = vsyncpa [#allocation5], 1 }

</bundles_post_ra>
